<compile_context>
chip_gen: v5e
topology: v5e:2x2
jax: 0.10.0
libtpu: 0.0.40
codegen_flags: <defaults>
</compile_context>

<pallas_src>
import functools
import math

import jax
import jax.numpy as jnp
from jax.experimental import pallas as pl
from jax.experimental.pallas import tpu as pltpu

_MASK_VALUE = -1e30  # finite "minus infinity": keeps max()/exp() NaN-free even on fully-masked tiles


def _attention_kernel(q_ref, v_ref, acc_out, m_out, l_out,
                      m_sc, l_sc, acc_sc, *,
                      seq_len, s_tile, tiles_per_half, needs_mask):
    h = pl.program_id(0)          # sequence half (parallel -> one per TensorCore on v7x)
    t = pl.program_id(1)          # tile within the half (reduction axis)

    @pl.when(t == 0)
    def _():
        m_sc[...] = jnp.full(m_sc.shape, _MASK_VALUE, jnp.float32)
        l_sc[...] = jnp.zeros(l_sc.shape, jnp.float32)
        acc_sc[...] = jnp.zeros(acc_sc.shape, jnp.float32)

    q = q_ref[...]                # (1, D), already scaled by 1/sqrt(D)
    v = v_ref[...]                # (s_tile, D), native dtype

    if needs_mask:
        # Global row offset of this tile; uses the *unclamped* tile index so that
        # duplicated / overhanging tiles of the second half mask themselves out fully.
        start = (h * tiles_per_half + t) * s_tile
        row = start + jax.lax.broadcasted_iota(jnp.int32, (s_tile, 1), 0)
        rvalid = row < seq_len
        # Zero out-of-range rows: data past the array end is garbage (possibly NaN/Inf)
        # and 0-weight x NaN would poison the accumulator.
        v = jnp.where(rvalid, v, jnp.zeros((), v.dtype))

    # Lane-dense scores (1, s_tile): contract D of q with D of v (trans_b matmul on MXU).
    scores = jax.lax.dot_general(
        q, v, (((1,), (1,)), ((), ())), preferred_element_type=jnp.float32)

    if needs_mask:
        col = start + jax.lax.broadcasted_iota(jnp.int32, scores.shape, 1)
        scores = jnp.where(col < seq_len, scores, _MASK_VALUE)

    # Online softmax update (all reductions along the fast last axis).
    m_prev = m_sc[...]                                   # (1, 1)
    m_cur = jnp.max(scores, axis=-1, keepdims=True)      # (1, 1)
    m_new = jnp.maximum(m_prev, m_cur)
    alpha = jnp.exp(m_prev - m_new)                      # (1, 1)
    p = jnp.exp(scores - m_new)                          # (1, s_tile)

    l_sc[...] = alpha * l_sc[...] + jnp.sum(p, axis=-1, keepdims=True)
    acc_sc[...] = alpha * acc_sc[...] + jnp.dot(
        p.astype(v.dtype), v, preferred_element_type=jnp.float32)
    m_sc[...] = m_new

    @pl.when(t == pl.num_programs(1) - 1)
    def _():
        acc_out[...] = acc_sc[...].reshape(acc_out.shape)
        m_out[...] = m_sc[...].reshape(m_out.shape)
        l_out[...] = l_sc[...].reshape(l_out.shape)


def attention_forward(query: jax.Array, values: jax.Array, *,
                      block_rows=None) -> jax.Array:
    """query: (decoder_dim,), values: (seq_len, encoder_dim) -> (encoder_dim,) f32."""
    assert query.ndim == 1 and values.ndim == 2
    seq_len, enc_dim = values.shape
    dec_dim = query.shape[0]
    assert enc_dim == dec_dim, "dot-product attention needs encoder_dim == decoder_dim"
    assert seq_len >= 1

    # Fold 1/sqrt(D) into the (1, D) query once, outside the kernel.
    scale = 1.0 / math.sqrt(dec_dim)
    q2 = (query.astype(jnp.float32) * scale).astype(values.dtype).reshape(1, dec_dim)

    # --- Size the sequence tile by *bytes*, not by a fixed row count. ---
    # ~2 MiB per streamed values block amortizes the ~0.35 us per-grid-step overhead;
    # the per-buffer cap keeps 2x double-buffered tiles + scratch comfortably inside
    # v7x's 64 MiB physical VMEM (also fine on v5e/v6e's 128 MiB).
    itemsize = jnp.dtype(values.dtype).itemsize
    row_bytes = enc_dim * itemsize
    target_tile_bytes = 2 * 1024 * 1024
    per_buffer_cap_bytes = 20 * 1024 * 1024
    rows_target = max(8, (target_tile_bytes // row_bytes) // 8 * 8)
    rows_cap = max(8, (per_buffer_cap_bytes // row_bytes) // 8 * 8)
    seq_rounded = pl.cdiv(seq_len, 8) * 8
    s_tile = int(min(rows_target, rows_cap, seq_rounded))
    if block_rows is not None:                       # explicit override (tests)
        s_tile = int(min(max(8, (block_rows // 8) * 8), seq_rounded))

    num_tiles = pl.cdiv(seq_len, s_tile)
    # Split the sequence tiles into two halves along a leading "parallel" grid axis so
    # both TensorCores of a v7x chip stream `values` concurrently (no-op on v5e/v6e).
    tiles_per_half = pl.cdiv(num_tiles, 2)
    covered = 2 * tiles_per_half * s_tile
    needs_mask = covered > seq_len                   # ragged tail and/or overhang tiles

    def values_map(h, t):
        # Clamp so overhang tiles re-read a valid block instead of running fully off the
        # end of the array; the kernel masks their contribution to exactly zero.
        return (jnp.minimum(h * tiles_per_half + t, num_tiles - 1), 0)

    kernel = functools.partial(
        _attention_kernel, seq_len=seq_len, s_tile=s_tile,
        tiles_per_half=tiles_per_half, needs_mask=needs_mask)

    tile_bytes = s_tile * row_bytes
    vmem_limit = int(min(48 * 1024 * 1024,
                         max(32 * 1024 * 1024, 2 * tile_bytes + 4 * 1024 * 1024)))

    acc_p, m_p, l_p = pl.pallas_call(
        kernel,
        out_shape=(
            jax.ShapeDtypeStruct((2, 1, enc_dim), jnp.float32),  # per-half weighted sum
            jax.ShapeDtypeStruct((2, 1, 1), jnp.float32),        # per-half running max
            jax.ShapeDtypeStruct((2, 1, 1), jnp.float32),        # per-half denominator
        ),
        grid_spec=pltpu.PrefetchScalarGridSpec(
            num_scalar_prefetch=0,
            grid=(2, tiles_per_half),
            in_specs=[
                pl.BlockSpec((1, dec_dim), lambda h, t: (0, 0)),     # query: resident
                pl.BlockSpec((s_tile, enc_dim), values_map),         # values: streamed
            ],
            out_specs=(
                pl.BlockSpec((1, 1, enc_dim), lambda h, t: (h, 0, 0)),
                pl.BlockSpec((1, 1, 1), lambda h, t: (h, 0, 0)),
                pl.BlockSpec((1, 1, 1), lambda h, t: (h, 0, 0)),
            ),
            scratch_shapes=[
                pltpu.VMEM((1, 1), jnp.float32),         # running max m
                pltpu.VMEM((1, 1), jnp.float32),         # running denom l
                pltpu.VMEM((1, enc_dim), jnp.float32),   # running weighted sum
            ],
        ),
        compiler_params=pltpu.CompilerParams(
            dimension_semantics=("parallel", "arbitrary"),
            vmem_limit_bytes=vmem_limit,
        ),
    )(q2, values)

    # Exact log-sum-exp merge of the two halves (tiny, plain jnp; exact division here
    # instead of the in-kernel approx reciprocal).
    m = m_p[:, 0, 0]                       # (2,)
    l = l_p[:, 0, 0]                       # (2,)
    acc = acc_p[:, 0, :]                   # (2, enc_dim)
    m_tot = jnp.max(m)
    w = jnp.exp(m - m_tot)                 # (2,)
    denom = jnp.sum(l * w)
    return jnp.sum(acc * w[:, None], axis=0) / denom


def _reference(query, values):
    scores = (values.astype(jnp.float32) @ query.astype(jnp.float32)) / math.sqrt(query.shape[0])
    w = jax.nn.softmax(scores, axis=0)
    return w @ values.astype(jnp.float32)


if __name__ == "__main__":
    encoder_dim = 32
    decoder_dim = 32

    key = jax.random.PRNGKey(0)
    kq, kv, kv2, kv3 = jax.random.split(key, 4)
    query = jax.random.normal(kq, (decoder_dim,), dtype=jnp.float32)

    # 1) single tile; second "half" of the parallel split is fully masked out.
    values = jax.random.normal(kv, (8, encoder_dim), dtype=jnp.float32)
    out = attention_forward(query, values)
    jax.block_until_ready(out)
    ref = _reference(query, values)
    assert out.shape == (encoder_dim,)
    assert jnp.allclose(out, ref, atol=1e-5, rtol=1e-5)

    # 2) multi-tile online softmax + ragged-tail masking (no wrapper pad).
    values2 = jax.random.normal(kv2, (200, encoder_dim), dtype=jnp.float32)
    out2 = attention_forward(query, values2, block_rows=64)
    jax.block_until_ready(out2)
    ref2 = _reference(query, values2)
    assert jnp.allclose(out2, ref2, atol=1e-5, rtol=1e-5)

    # 3) evenly divisible sequence: mask-free fast path, both halves do real work.
    values3 = jax.random.normal(kv3, (256, encoder_dim), dtype=jnp.float32)
    out3 = attention_forward(query, values3, block_rows=64)
    jax.block_until_ready(out3)
    ref3 = _reference(query, values3)
    assert jnp.allclose(out3, ref3, atol=1e-5, rtol=1e-5)

    print("KERNEL_OK")
</pallas_src>

<mosaic_0001>
module attributes {stable_mosaic.version = 11 : i64} {
  func.func @_attention_kernel(%arg0: i32, %arg1: i32, %arg2: memref<1x32xf32, #tpu.memory_space<vmem>>, %arg3: memref<8x32xf32, #tpu.memory_space<vmem>>, %arg4: memref<1x1x32xf32, #tpu.memory_space<vmem>>, %arg5: memref<1x1x1xf32, #tpu.memory_space<vmem>>, %arg6: memref<1x1x1xf32, #tpu.memory_space<vmem>>, %arg7: memref<1x1xf32, #tpu.memory_space<vmem>>, %arg8: memref<1x1xf32, #tpu.memory_space<vmem>>, %arg9: memref<1x32xf32, #tpu.memory_space<vmem>>) attributes {dimension_semantics = [#tpu.dimension_semantics<parallel>, #tpu.dimension_semantics<arbitrary>], iteration_bounds = array<i64: 2, 1>, scalar_prefetch = 0 : i64, scratch_operands = 3 : i64, tpu.core_type = #tpu.core_type<tc>, window_params = [{pipeline_mode = #tpu.pipeline_mode<synchronous>, transform_indices = @transform_0, window_bounds = array<i64: 1, 32>}, {transform_indices = @transform_1, window_bounds = array<i64: 8, 32>}, {transform_indices = @transform_2, window_bounds = array<i64: 1, 1, 32>}, {transform_indices = @transform_3, window_bounds = array<i64: 1, 1, 1>}, {transform_indices = @transform_4, window_bounds = array<i64: 1, 1, 1>}]} {
    %c0_i32 = arith.constant 0 : i32
    %0 = arith.cmpi eq, %arg1, %c0_i32 : i32
    %1 = arith.extui %0 : i1 to i32
    %c0_i32_0 = arith.constant 0 : i32
    %2 = arith.cmpi ne, %1, %c0_i32_0 : i32
    scf.if %2 {
      %cst_25 = arith.constant -1.000000e+30 : f32
      %50 = vector.broadcast %cst_25 : f32 to vector<1x1xf32>
      %c0_26 = arith.constant 0 : index
      %c0_27 = arith.constant 0 : index
      %51 = vector.load %arg7[%c0_26, %c0_27] : memref<1x1xf32, #tpu.memory_space<vmem>>, vector<1x1xf32>
      tpu.vector_store %arg7[%c0_26, %c0_27], %50 {strides = array<i32>} : memref<1x1xf32, #tpu.memory_space<vmem>>, vector<1x1xf32>,
      %cst_28 = arith.constant 0.000000e+00 : f32
      %52 = vector.broadcast %cst_28 : f32 to vector<1x1xf32>
      %c0_29 = arith.constant 0 : index
      %c0_30 = arith.constant 0 : index
      %53 = vector.load %arg8[%c0_29, %c0_30] : memref<1x1xf32, #tpu.memory_space<vmem>>, vector<1x1xf32>
      tpu.vector_store %arg8[%c0_29, %c0_30], %52 {strides = array<i32>} : memref<1x1xf32, #tpu.memory_space<vmem>>, vector<1x1xf32>,
      %cst_31 = arith.constant 0.000000e+00 : f32
      %54 = vector.broadcast %cst_31 : f32 to vector<1x32xf32>
      %c0_32 = arith.constant 0 : index
      %c0_33 = arith.constant 0 : index
      %55 = vector.load %arg9[%c0_32, %c0_33] : memref<1x32xf32, #tpu.memory_space<vmem>>, vector<1x32xf32>
      tpu.vector_store %arg9[%c0_32, %c0_33], %54 {strides = array<i32>} : memref<1x32xf32, #tpu.memory_space<vmem>>, vector<1x32xf32>,
    } else {
    }
    %c0 = arith.constant 0 : index
    %c0_1 = arith.constant 0 : index
    %3 = vector.load %arg2[%c0, %c0_1] : memref<1x32xf32, #tpu.memory_space<vmem>>, vector<1x32xf32>
    %c0_2 = arith.constant 0 : index
    %c0_3 = arith.constant 0 : index
    %4 = vector.load %arg3[%c0_2, %c0_3] : memref<8x32xf32, #tpu.memory_space<vmem>>, vector<8x32xf32>
    %c1_i32 = arith.constant 1 : i32
    %5 = arith.muli %arg0, %c1_i32 : i32
    %6 = arith.addi %5, %arg1 : i32
    %c8_i32 = arith.constant 8 : i32
    %7 = arith.muli %6, %c8_i32 : i32
    %8 = tpu.iota {dimensions = array<i32: 0>} : vector<8x1xi32>
    %9 = vector.broadcast %7 : i32 to vector<8x1xi32>
    %10 = arith.addi %9, %8 : vector<8x1xi32>
    %c8_i32_4 = arith.constant 8 : i32
    %11 = vector.broadcast %c8_i32_4 : i32 to vector<8x1xi32>
    %12 = arith.cmpi slt, %10, %11 : vector<8x1xi32>
    %cst = arith.constant 0.000000e+00 : f32
    %13 = vector.shape_cast %12 : vector<8x1xi1> to vector<8x1xi1>
    %14 = vector.broadcast %13 : vector<8x1xi1> to vector<8x32xi1>
    %15 = vector.broadcast %cst : f32 to vector<8x32xf32>
    %16 = arith.select %14, %4, %15 : vector<8x32xi1>, vector<8x32xf32>
    %cst_5 = arith.constant dense<0.000000e+00> : vector<1x8xf32>
    %17 = tpu.matmul %3, %16, %cst_5 {dimension_numbers = #tpu.dot_dimension_numbers<[1], [1], [0], [0], [0, 0, 1, 0], [], []>} : vector<1x32xf32>, vector<8x32xf32>, vector<1x8xf32> -> vector<1x8xf32>
    %18 = tpu.iota {dimensions = array<i32: 1>} : vector<1x8xi32>
    %19 = vector.broadcast %7 : i32 to vector<1x8xi32>
    %20 = arith.addi %19, %18 : vector<1x8xi32>
    %c8_i32_6 = arith.constant 8 : i32
    %21 = vector.broadcast %c8_i32_6 : i32 to vector<1x8xi32>
    %22 = arith.cmpi slt, %20, %21 : vector<1x8xi32>
    %cst_7 = arith.constant -1.000000e+30 : f32
    %23 = vector.broadcast %cst_7 : f32 to vector<1x8xf32>
    %24 = arith.select %22, %17, %23 : vector<1x8xi1>, vector<1x8xf32>
    %c0_8 = arith.constant 0 : index
    %c0_9 = arith.constant 0 : index
    %25 = vector.load %arg7[%c0_8, %c0_9] : memref<1x1xf32, #tpu.memory_space<vmem>>, vector<1x1xf32>
    %cst_10 = arith.constant dense<0xFF800000> : vector<1xf32>
    %26 = vector.multi_reduction <maximumf>, %24, %cst_10 [1] : vector<1x8xf32> to vector<1xf32>
    %27 = vector.shape_cast %26 : vector<1xf32> to vector<1x1xf32>
    %28 = arith.maximumf %25, %27 : vector<1x1xf32>
    %29 = arith.subf %25, %28 : vector<1x1xf32>
    %30 = math.exp %29 : vector<1x1xf32>
    %31 = vector.broadcast %28 : vector<1x1xf32> to vector<1x8xf32>
    %32 = arith.subf %24, %31 : vector<1x8xf32>
    %33 = math.exp %32 : vector<1x8xf32>
    %c0_11 = arith.constant 0 : index
    %c0_12 = arith.constant 0 : index
    %34 = vector.load %arg8[%c0_11, %c0_12] : memref<1x1xf32, #tpu.memory_space<vmem>>, vector<1x1xf32>
    %35 = arith.mulf %30, %34 : vector<1x1xf32>
    %cst_13 = arith.constant dense<0.000000e+00> : vector<1xf32>
    %36 = vector.multi_reduction <add>, %33, %cst_13 [1] : vector<1x8xf32> to vector<1xf32>
    %37 = vector.shape_cast %36 : vector<1xf32> to vector<1x1xf32>
    %38 = arith.addf %35, %37 : vector<1x1xf32>
    %c0_14 = arith.constant 0 : index
    %c0_15 = arith.constant 0 : index
    %39 = vector.load %arg8[%c0_14, %c0_15] : memref<1x1xf32, #tpu.memory_space<vmem>>, vector<1x1xf32>
    tpu.vector_store %arg8[%c0_14, %c0_15], %38 {strides = array<i32>} : memref<1x1xf32, #tpu.memory_space<vmem>>, vector<1x1xf32>,
    %c0_16 = arith.constant 0 : index
    %c0_17 = arith.constant 0 : index
    %40 = vector.load %arg9[%c0_16, %c0_17] : memref<1x32xf32, #tpu.memory_space<vmem>>, vector<1x32xf32>
    %41 = vector.broadcast %30 : vector<1x1xf32> to vector<1x32xf32>
    %42 = arith.mulf %41, %40 : vector<1x32xf32>
    %cst_18 = arith.constant dense<0.000000e+00> : vector<1x32xf32>
    %43 = tpu.matmul %33, %16, %cst_18 {dimension_numbers = #tpu.dot_dimension_numbers<[1], [0], [0], [1], [0, 0, 1, 1], [], []>} : vector<1x8xf32>, vector<8x32xf32>, vector<1x32xf32> -> vector<1x32xf32>
    %44 = arith.addf %42, %43 : vector<1x32xf32>
    %c0_19 = arith.constant 0 : index
    %c0_20 = arith.constant 0 : index
    %45 = vector.load %arg9[%c0_19, %c0_20] : memref<1x32xf32, #tpu.memory_space<vmem>>, vector<1x32xf32>
    tpu.vector_store %arg9[%c0_19, %c0_20], %44 {strides = array<i32>} : memref<1x32xf32, #tpu.memory_space<vmem>>, vector<1x32xf32>,
    %c0_21 = arith.constant 0 : index
    %c0_22 = arith.constant 0 : index
    %46 = vector.load %arg7[%c0_21, %c0_22] : memref<1x1xf32, #tpu.memory_space<vmem>>, vector<1x1xf32>
    tpu.vector_store %arg7[%c0_21, %c0_22], %28 {strides = array<i32>} : memref<1x1xf32, #tpu.memory_space<vmem>>, vector<1x1xf32>,
    %c0_i32_23 = arith.constant 0 : i32
    %47 = arith.cmpi eq, %arg1, %c0_i32_23 : i32
    %48 = arith.extui %47 : i1 to i32
    %c0_i32_24 = arith.constant 0 : i32
    %49 = arith.cmpi ne, %48, %c0_i32_24 : i32
    scf.if %49 {
      %c0_25 = arith.constant 0 : index
      %c0_26 = arith.constant 0 : index
      %50 = vector.load %arg9[%c0_25, %c0_26] : memref<1x32xf32, #tpu.memory_space<vmem>>, vector<1x32xf32>
      %51 = vector.shape_cast %50 : vector<1x32xf32> to vector<1x1x32xf32>
      %c0_27 = arith.constant 0 : index
      %c0_28 = arith.constant 0 : index
      %c0_29 = arith.constant 0 : index
      %52 = vector.load %arg4[%c0_27, %c0_28, %c0_29] : memref<1x1x32xf32, #tpu.memory_space<vmem>>, vector<1x1x32xf32>
      tpu.vector_store %arg4[%c0_27, %c0_28, %c0_29], %51 {strides = array<i32>} : memref<1x1x32xf32, #tpu.memory_space<vmem>>, vector<1x1x32xf32>,
      %c0_30 = arith.constant 0 : index
      %c0_31 = arith.constant 0 : index
      %53 = vector.load %arg7[%c0_30, %c0_31] : memref<1x1xf32, #tpu.memory_space<vmem>>, vector<1x1xf32>
      %54 = vector.shape_cast %53 : vector<1x1xf32> to vector<1x1x1xf32>
      %c0_32 = arith.constant 0 : index
      %c0_33 = arith.constant 0 : index
      %c0_34 = arith.constant 0 : index
      %55 = vector.load %arg5[%c0_32, %c0_33, %c0_34] : memref<1x1x1xf32, #tpu.memory_space<vmem>>, vector<1x1x1xf32>
      tpu.vector_store %arg5[%c0_32, %c0_33, %c0_34], %54 {strides = array<i32>} : memref<1x1x1xf32, #tpu.memory_space<vmem>>, vector<1x1x1xf32>,
      %c0_35 = arith.constant 0 : index
      %c0_36 = arith.constant 0 : index
      %56 = vector.load %arg8[%c0_35, %c0_36] : memref<1x1xf32, #tpu.memory_space<vmem>>, vector<1x1xf32>
      %57 = vector.shape_cast %56 : vector<1x1xf32> to vector<1x1x1xf32>
      %c0_37 = arith.constant 0 : index
      %c0_38 = arith.constant 0 : index
      %c0_39 = arith.constant 0 : index
      %58 = vector.load %arg6[%c0_37, %c0_38, %c0_39] : memref<1x1x1xf32, #tpu.memory_space<vmem>>, vector<1x1x1xf32>
      tpu.vector_store %arg6[%c0_37, %c0_38, %c0_39], %57 {strides = array<i32>} : memref<1x1x1xf32, #tpu.memory_space<vmem>>, vector<1x1x1xf32>,
    } else {
    }
    return
  }
  func.func @transform_0(%arg0: i32, %arg1: i32) -> (i32, i32) {
    %c0_i32 = arith.constant 0 : i32
    %c0_i32_0 = arith.constant 0 : i32
    %c0_i32_1 = arith.constant 0 : i32
    return %c0_i32, %c0_i32_0 : i32, i32
  }
  func.func @transform_1(%arg0: i32, %arg1: i32) -> (i32, i32) {
    %c1_i32 = arith.constant 1 : i32
    %0 = arith.muli %arg0, %c1_i32 : i32
    %1 = arith.addi %0, %arg1 : i32
    %c0_i32 = arith.constant 0 : i32
    %2 = arith.minsi %1, %c0_i32 : i32
    %c0_i32_0 = arith.constant 0 : i32
    %c0_i32_1 = arith.constant 0 : i32
    return %2, %c0_i32_0 : i32, i32
  }
  func.func @transform_2(%arg0: i32, %arg1: i32) -> (i32, i32, i32) {
    %c0_i32 = arith.constant 0 : i32
    %c0_i32_0 = arith.constant 0 : i32
    %c0_i32_1 = arith.constant 0 : i32
    return %arg0, %c0_i32, %c0_i32_0 : i32, i32, i32
  }
  func.func @transform_3(%arg0: i32, %arg1: i32) -> (i32, i32, i32) {
    %c0_i32 = arith.constant 0 : i32
    %c0_i32_0 = arith.constant 0 : i32
    %c0_i32_1 = arith.constant 0 : i32
    return %arg0, %c0_i32, %c0_i32_0 : i32, i32, i32
  }
  func.func @transform_4(%arg0: i32, %arg1: i32) -> (i32, i32, i32) {
    %c0_i32 = arith.constant 0 : i32
    %c0_i32_0 = arith.constant 0 : i32
    %c0_i32_1 = arith.constant 0 : i32
    return %arg0, %c0_i32, %c0_i32_0 : i32, i32, i32
  }
}

</mosaic_0001>

<bundles_post_ra>
// kernel: tpu_custom_call.1
= control target key start
LH: loop header
LB: loop body
LE: loop exit
PB: predicated region body
PF: predicated region fallthrough
CT: control target
= control target key end

     0   :  { %10 = vsyncpa [#allocation6], 0  ;;  %s1038_s0 = inlined_call_operand.hbm [shape: f32[1,32], index: 0, kind: input, shape index: {}]   ;;  %s1039_s1 = inlined_call_operand.hbm [shape: f32[8,32], index: 1, kind: input, shape index: {}]   ;;  %s1040_s2 = inlined_call_operand.hbm [shape: f32[2,1,32], index: 2, kind: output, shape index: {0}]   ;;  %s1041_s3 = inlined_call_operand.vmem [shape: f32[2,1,1], index: 3, kind: output, shape index: {1}]   ;;  %s1042_s4 = inlined_call_operand.vmem [shape: f32[2,1,1], index: 4, kind: output, shape index: {2}]  }
   0x1   :  { %11 = vsyncpa [#allocation9], 0 }
   0x2   :  { %13 = vsyncpa [#allocation9 + $0x1], 0 }
   0x3   :  { %14 = vsyncpa [#allocation7], 0 }
   0x4   :  { %16 = vsyncpa [#allocation7 + $0x1], 0  ;;  %s865_s15 = smov 0   ;;  %s867_s16 = smov 0  }
   0x5   :  { %s869_s17 = smov 0   ;;  %s871_s18 = smov 0  }
   0x6   :  { %s873_s19 = smov 0   ;;  %s875_s20 = smov 0  }
   0x7   :  { %s877_s21 = smov 0   ;;  %s879_s22 = smov 0  }
   0x8 LB: > { %s543_s23 = sadd.s32 4294967295, %s833_s22   ;;  %s544_s24 = sadd.s32 4294967294, %s833_s22   ;;  %s833_s22 = sphi %s879_s22, %s22_s22   ;;  %s829_s21 = sphi %s877_s21, %s1055_s21   ;;  %s825_s20 = sphi %s875_s20, %s1054_s20   ;;  %s821_s19 = sphi %s873_s19, %s1028_s19   ;;  %s817_s18 = sphi %s871_s18, %s1053_s18   ;;  %s813_s17 = sphi %s869_s17, %s1052_s17   ;;  %s809_s16 = sphi %s867_s16, %s1051_s16   ;;  %s805_s15 = sphi %s865_s15, %s1050_s15  }
   0x9   : > { %p81_p0 = scmp.ne.s32.totalorder %s821_s19, %s817_s18  ;;  %p906_p1 = scmp.eq.s32.totalorder %s543_s23, 0 }
   0xa   : > { %p104_p2 = scmp.ne.s32.totalorder %s813_s17, %s809_s16  ;;  %p105_p4 = scmp.eq.s32.totalorder %s543_s23, 1 }
   0xb   : > { %p914_p3 = por %p906_p1, %p81_p0  ;;  %p110_p5 = scmp.ne.s32.totalorder %s809_s16, %s805_s15 }
   0xc   : > { %p111_p6 = scmp.eq.s32.totalorder %s544_s24, 1  ;;  %p920_p7 = por %p105_p4, %p104_p2 }
   0xd   : > { %p545_p8 = scmp.ge.s32.totalorder %s833_s22, 1  ;;  %p170_p10 = scmp.lt.s32.totalorder %s833_s22, 3 }
   0xe   : > { %p925_p9 = por %p111_p6, %p110_p5  ;;  %s182_s5 = sshll.u32 %s1038_s0, 4  ;;  %s183_s5 = int_to_ptr.hbm [resolvable:$true] %s182_s5 }
   0xf   : > { %p933_p11 = pnand %p545_p8, %p170_p10  ;;  %s835_s7 = smov [#allocation5]  }
  0x10   : > { %s1046_s28 = scalar_select %p925_p9, 1, 0 }
  0x11   : > { %p568_p13 = pneg %p933_p11  ;;  %s184_s8 = sshll.u32 %s835_s7, 4  ;;  %s185_s8 = int_to_ptr.vmem [resolvable:$true] %s184_s8 }
  0x12   : > { %s34_s9 = sadd.s32 1, %s829_s21  ;;  %s94_s10 = sadd.s32 1, %s813_s17 }
  0x13   : > { %p569_p0 = pnand %p568_p13, %p906_p1  ;;  %p36_p2 = scmp.ge.s32.totalorder %s34_s9, 2 }
  0x14   : > { %p802_p4 = scmp.ne.s32.totalorder %s821_s19, 0  ;;  %p76_p5 = scmp.eq.s32.totalorder %s833_s22, 0 }
  0x15   : > { %571 = dma.hbm_to_vmem [thread:$0]  (!%p569_p0), %s183_s5, 16, %s185_s8, [#allocation6]  }
  0x16   : > { %s1057_s9 = smov (%p36_p2, %s34_s9), 0  ;;  %p581_p8 = scmp.lt.s32.totalorder %s833_s22, 2 }
  0x17   : > { %s91_s11 = ssub.s32 %s829_s21, %s1057_s9  ;;  %p77_p10 = por %p802_p4, %p76_p5 }
  0x18   : > { %p92_p6 = scmp.eq.s32.totalorder %s91_s11, 0  ;;  %s208_s18 = sshll.u32 %s1039_s1, 4  ;;  %s209_s18 = int_to_ptr.hbm [resolvable:$true] %s208_s18 }
  0x19   : > { %s836_s23 = smov [#allocation8]   ;;  %p573_p13 = pnand %p581_p8, %p77_p10 }
  0x1a   : > { %s952_s12 = scalar_select %p92_p6, %s813_s17, %s94_s10  }
  0x1b   : > { %s210_s24 = sshll.u32 %s836_s23, 4  ;;  %s696_s29 = sshra.s32 %s209_s18, 4  ;;  %s211_s24 = int_to_ptr.vmem [resolvable:$true] %s210_s24  ;;  %s697_s29 = int_to_ptr.hbm [resolvable:$true] %s696_s29 }
  0x1c   : > { %s698_s30 = scalar_lea.hbm %s697_s29, 8  ;;  %p700_p2 = pneg %p573_p13 }
  0x1d   : > { %p699_p0 = scmp.ne.s32.totalorder %s697_s29, %s698_s30  ;;  %s703_s8 = scalar_lea.hbm %s1039_s1, 8 }
  0x1e   : > { %p705_p4 = scmp.lt.s32.totalorder %s703_s8, %s698_s30 }
  0x1f   : > { %p701_p12 = pnand %p700_p2, %p699_p0 }
  0x21   : > { %p702_p9 = pneg %p701_p12 }
  0x23   : > { %p707_p5 = pnand %p705_p4, %p702_p9 }
  0x25   : > { %710 = shalt.err (!%p707_p5)
}
  0x26   : > { %575 = dma.hbm_to_vmem [thread:$0]  (!%p573_p13), %s209_s18, 128, %s211_s24, [#allocation9]  }
  0x27   : > { %219 = sbr.rel (%p933_p11) target bundleno = 573 (0x23d), region = 28 }
  0x2c   : > { %791 = dma.done.wait (%p906_p1), [#allocation6], 16  }
  0x2d   : > { %793 = vsyncadd (%p906_p1), [#allocation6], 4294967280  ;;  %s226_s10 = sand.u32 1, %s821_s19  }
  0x2e   : > { %s552_s11 = sshll.u32 %s226_s10, 3  ;;  %s227_s13 = scalar_lea.sflag [#allocation9], %s226_s10 }
  0x2f   : > { %s230_s14 = scalar_lea.vmem [#allocation8], %s552_s11 }
  0x30   : > { %795 = dma.done.wait (%p914_p3), %s227_s13, 128  }
  0x31   : > { %797 = vsyncadd (%p914_p3), %s227_s13, 4294967168  ;;  %s553_s6 = sshll.u32 %s825_s20, 3  ;;  %v283_v0 = vlaneseq  ;;  %vm291_vm1 = vcmask 261120   ;;  %v280_v4 = vld [vmem:[%s230_s14] sm:$0xff]  ;;  %v279_v6 = vld [vmem:[#allocation5] sm:$0x1]  ;;  %s409_s10 = scalar_lea.hbm %s1040_s2, %s825_s20 }
  0x32   : > { %v285_v1 = vstv %s553_s6  ;;  %vm274_vm2 = vcmask 0   ;;  %v837_v7 = vmov -1e+30   ;;  %vm324_vm4 = vcmask 57344   ;;  %p264_p1 = scmp.lt.s32.totalorder %s825_s20, 1  ;;  %s249_s5 = sand.u32 1, %s809_s16  }
  0x33   : > { %v284_v2 = vshrl.u32 %v283_v0, 7  ;;  %275 = vst.msk [vmem:[#allocation2] sm:$0x1] %vm274_vm2, %v837_v7  ;;  %v319_v8 = vand.u32 127, %v283_v0  ;;  %v838_v13 = vmov 0   ;;  %v839_v14 = vmov 0.0  }
  0x34   : > { %660 = vset.pattern.permute.xlu0 %v838_v13  ;;  %661 = vset.pattern.permute.xlu1 %v838_v13  ;;  %276 = vst.msk [vmem:[#allocation3] sm:$0x1] %vm274_vm2, %v839_v14  ;;  %s978_s25 = scalar_select %p264_p1, %s825_s20, 1  ;;  %vm277_vm5 = vcmask 253952   ;;  %vm357_vm6 = vcmask 64512  }
  0x35   : > { %v286_v3 = vadd.s32 %v285_v1, %v284_v2  ;;  %v320_v9 = vadd.s32 %v319_v8, %v285_v1  ;;  %278 = vst.msk [vmem:[#allocation4] sm:$0x1] %vm277_vm5, %v839_v14  ;;  %s250_s11 = scalar_lea.vmem [#allocation10], %s249_s5  ;;  %s413_s14 = sshll.u32 %s409_s10, 4  ;;  %s414_s14 = int_to_ptr.hbm [resolvable:$true] %s413_s14 }
  0x36   : > { %s266_s23 = scalar_lea.vmem %s1041_s3, %s978_s25  ;;  %s269_s30 = scalar_lea.vmem %s1042_s4, %s978_s25 }
  0x37   : > { %vm287_vm0 = vcmp.lt.s32.totalorder %v286_v3, 8  ;;  %vm321_vm3 = vcmp.lt.s32.totalorder %v320_v9, 8  ;;  %s411_s13 = sshll.u32 %s250_s11, 4  ;;  %s395_s6 = scalar_lea.sflag [#allocation7], %s249_s5  ;;  %s412_s13 = int_to_ptr.vmem [resolvable:$true] %s411_s13 }
  0x38   : > { %v290_v5 = vsel %vm287_vm0, %v280_v4, 0.0  ;;  %556 = vmatpush.msk.msra.mxu1 %vm287_vm0, %v280_v4  ;;  %s740_s25 = sshra.s32 %s414_s14, 4  ;;  %s746_s20 = scalar_lea.hbm %s1040_s2, 2  ;;  %s741_s25 = int_to_ptr.hbm [resolvable:$true] %s740_s25 }
  0x39   : > { %554 = vmatpush.xpose.msk.msra.mxu0 %vm291_vm1, %v290_v5  ;;  %s742_s26 = scalar_lea.hbm %s741_s25, 1  ;;  %p747_p12 = scmp.lt.s32.totalorder %s741_s25, %s1040_s2 }
  0x3a   : > { %v323_v15 = vld [vmem:[#allocation2] sm:$0x1]  ;;  %p743_p3 = scmp.ne.s32.totalorder %s741_s25, %s742_s26  ;;  %p748_p6 = scmp.lt.s32.totalorder %s746_s20, %s742_s26 }
  0x3b   : > { %v341_v29 = vld [vmem:[#allocation3] sm:$0x1] }
  0x3c   : > { %555 = vmatmul.msk.f32.vlgmr.msra.gmra.mxu0 %vm291_vm1, %v279_v6  ;;  %v349_v34 = vld [vmem:[#allocation4] sm:$0x1]  ;;  %p744_p9 = pnand %p743_p3, %p920_p7  ;;  %p749_p8 = por %p748_p6, %p747_p12 }
  0x3e   : > { %p745_p11 = pneg %p744_p9 }
  0x40   : > { %p750_p10 = pnand %p749_p8, %p745_p11 }
  0xb9   : > { %v315_v10 = vpop.f32.mrf.mxu0 }
  0xba   : > { %v322_v11 = vsel %vm321_vm3, %v315_v10, -1e+30 }
  0xbb   : > { %v325_v12 = vsel %vm324_vm4, %v322_v11, -inf }
  0xbc   : > { %326 = vmax.xlane.f32.xlu0 %v325_v12 }
 0x12f   : > { %v327_v16 = vpop.xlane.xlu0 %326 }
 0x130   : > { %v328_v17 = vmax.f32 %v323_v15, %v327_v16 }
 0x132   : > { %v329_v18 = vsub.f32 %v323_v15, %v328_v17  ;;  %384 = vst.msk [vmem:[#allocation2] sm:$0x1] %vm274_vm2, %v328_v17  ;;  %334 = vperm.xlu0 %660, %v328_v17  }
 0x134   : > { %v330_v19 = vmul.f32 1.442695, %v329_v18 }
 0x136   : > { %662 = vpow2.f32 %v330_v19 }
 0x139   : > { %v390_v20 = vld [vmem:[#allocation2] sm:$0x1] }
 0x13a   : > { %391 = vst.msk [vmem:[%s266_s23] sm:$0x1] %vm274_vm2, %v390_v20 }
 0x13c   : > { %v663_v21 = vpop.eup %662 }
 0x13d   : > { %352 = vperm.xlu1 %661, %v663_v21   ;;  %v342_v30 = vmul.f32 %v663_v21, %v341_v29 }
 0x1a4   : > { %v335_v22 = vpop.permute.xlu0 %334 }
 0x1a5   : > { %v337_v23 = vperm.slane %v335_v22, 0 }
 0x1a7   : > { %v338_v24 = vsub.f32 %v322_v11, %v337_v23 }
 0x1a9   : > { %v339_v25 = vmul.f32 1.442695, %v338_v24 }
 0x1ab   : > { %664 = vpow2.f32 %v339_v25 }
 0x1af   : > { %v353_v28 = vpop.permute.xlu1 %352 }
 0x1b0   : > { %v355_v33 = vperm.slane %v353_v28, 0 }
 0x1b1   : > { %v665_v26 = vpop.eup %664 }
 0x1b2   : > { %557 = vmatmul.msk.f32.vlgmr.msra.gmra.mxu1 %vm357_vm6, %v665_v26  ;;  %v343_v27 = vsel %vm324_vm4, %v665_v26, 0.0  ;;  %v356_v35 = vmul.f32 %v355_v33, %v349_v34 }
 0x1b3   : > { %344 = vadd.xlane.f32.xlu1 %v343_v27 }
 0x226   : > { %v345_v31 = vpop.xlane.xlu1 %344 }
 0x227   : > { %v346_v32 = vadd.f32 %v345_v31, %v342_v30 }
 0x229   : > { %348 = vst.msk [vmem:[#allocation3] sm:$0x1] %vm274_vm2, %v346_v32 }
 0x22f   : > { %v378_v36 = vpop.f32.mrf.mxu1 }
 0x230   : > { %v392_v37 = vld [vmem:[#allocation3] sm:$0x1]  ;;  %v381_v38 = vadd.f32 %v378_v36, %v356_v35 }
 0x231   : > { %393 = vst.msk [vmem:[%s269_s30] sm:$0x1] %vm274_vm2, %v392_v37 }
 0x232   : > { %383 = vst.msk [vmem:[#allocation4] sm:$0x1] %vm277_vm5, %v381_v38 }
 0x239   : > { %v388_v39 = vld [vmem:[#allocation4] sm:$0x1] }
 0x23a   : > { %389 = vst.msk [vmem:[%s250_s11] sm:$0x1] %vm277_vm5, %v388_v39 }
 0x23b   : > { %753 = shalt.err (!%p750_p10)
}
 0x23c   : > { %566 = dma.vmem_to_hbm [thread:$0]  (%p920_p7), %s412_s13, 16, %s414_s14, %s395_s6  }
 0x23d PF: > { %s431_s30 = sand.u32 1, %s805_s15   ;;  %p1048_p13 = scmp.ne.s32.totalorder %s1046_s28, 0 }
 0x23e   : > { %p1049_p0 = scmp.ge.s32.totalorder %s833_s22, 2  ;;  %s432_s5 = scalar_lea.sflag [#allocation7], %s431_s30 }
 0x240   : > { %p577_p2 = pnand %p1049_p0, %p1048_p13 }
 0x242   : > { %p578_p4 = pneg %p577_p2 }
 0x244   : > { %799 = dma.done.wait (%p578_p4), %s432_s5, 16  }
 0x245   : > { %801 = vsyncadd (%p578_p4), %s432_s5, 4294967280  ;;  %s22_s22 = sadd.s32 1, %s833_s22   ;;  %s1050_s15 = smov %s809_s16 }
 0x246   : > { %p19_p5 = scmp.ge.s32.totalorder %s22_s22, 4   ;;  %s1051_s16 = smov %s813_s17 }
 0x247   : > { %s1052_s17 = smov %s952_s12  ;;  %s1053_s18 = smov %s821_s19 }
 0x248   : > { %s1028_s19 = smov 0   ;;  %s1054_s20 = smov %s829_s21 }
 0x249   : > { %s1055_s21 = smov %s1057_s9  ;;  %21 = sbr.rel (!%p19_p5) target bundleno = 8 (0x8), region = 110 }
 0x24e   :  { %449 = vsyncpa [#allocation6], 1 }
 0x24f   :  { %451 = vsyncpa [#allocation6 + $0x1], 1 }
 0x250   :  { %452 = vsyncpa [#allocation9], 1 }
 0x251   :  { %454 = vsyncpa [#allocation9 + $0x1], 1 }
 0x252   :  { %455 = vsyncpa [#allocation7], 1 }
 0x253   :  { %457 = vsyncpa [#allocation7 + $0x1], 1 }

</bundles_post_ra>
